<compile_context>
chip_gen: v7x
topology: tpu7x:2x2x1
jax: 0.10.0
libtpu: 0.0.40
codegen_flags: <defaults>
</compile_context>

<pallas_src>
import functools

import jax
import jax.numpy as jnp
from jax.experimental import pallas as pl
from jax.experimental.pallas import tpu as pltpu


def _round_up(x, m):
    return ((x + m - 1) // m) * m


def dqn_kernel(x_ref, w1_ref, b1_ref, w2_ref, b2_ref, w3_ref, b3_ref, o_ref):
    # In-kernel bf16 cast of the activations feeding the MXU; f32 accumulation,
    # f32 bias add + ReLU (VPU) throughout.
    xb = x_ref[...].astype(jnp.bfloat16)
    # Layer 1: (TB, n_obs) @ (n_obs, 64)
    h1 = jnp.dot(xb, w1_ref[...], preferred_element_type=jnp.float32)
    h1 = jnp.maximum(h1 + b1_ref[...], 0.0)
    # Layer 2: (TB, 64) @ (64, 32)
    h2 = jnp.dot(h1.astype(jnp.bfloat16), w2_ref[...],
                 preferred_element_type=jnp.float32)
    h2 = jnp.maximum(h2 + b2_ref[...], 0.0)
    # Layer 3: (TB, 32) @ (32, A_pad)
    logits = jnp.dot(h2.astype(jnp.bfloat16), w3_ref[...],
                     preferred_element_type=jnp.float32)
    o_ref[...] = logits + b3_ref[...]


def prepare_params(params, n_actions):
    """One-time prep: pad the final layer's out-dim to a multiple of 8 and cast
    MXU-side weights to bf16. Call once; reuse across forward calls."""
    a_pad = max(8, _round_up(n_actions, 8))
    w3, b3 = params["w3"], params["b3"]
    assert n_actions <= a_pad
    w3p = jnp.zeros((w3.shape[0], a_pad), w3.dtype).at[:, :n_actions].set(w3)
    b3p = jnp.zeros((1, a_pad), b3.dtype).at[:, :n_actions].set(b3)
    return {
        "w1": params["w1"].astype(jnp.bfloat16), "b1": params["b1"],
        "w2": params["w2"].astype(jnp.bfloat16), "b2": params["b2"],
        "w3": w3p.astype(jnp.bfloat16), "b3": b3p,
    }


@functools.partial(jax.jit, static_argnames=("n_actions", "batch_tile"))
def dqn_forward(x, prepared, *, n_actions, batch_tile=2048):
    """Fused 3-layer MLP forward.

    x: (B, n_obs) f32. prepared: output of prepare_params(). Returns f32 logits
    of shape (B, n_actions).
    """
    w1, b1 = prepared["w1"], prepared["b1"]
    w2, b2 = prepared["w2"], prepared["b2"]
    w3, b3 = prepared["w3"], prepared["b3"]

    B, n_obs = x.shape
    a_pad = w3.shape[1]
    assert n_actions <= a_pad

    # ---- batch tile: multiple of 8 sublanes, bounded by batch_tile, sized from
    # B so pad waste stays small and we get >=2..4 tiles (feeds both v7x TCs). --
    b8 = _round_up(B, 8)
    target_tiles = 4
    tb = min(batch_tile, max(8, _round_up(-(-b8 // target_tiles), 8)))
    b_pad = _round_up(B, tb)
    if b_pad != B:
        x = jnp.pad(x, ((0, b_pad - B), (0, 0)))

    grid = (b_pad // tb,)

    def resident(arr):
        nd = arr.ndim
        return pl.BlockSpec(arr.shape, lambda i, _nd=nd: (0,) * _nd)

    out = pl.pallas_call(
        dqn_kernel,
        out_shape=jax.ShapeDtypeStruct((b_pad, a_pad), jnp.float32),
        grid=grid,
        in_specs=[
            pl.BlockSpec((tb, n_obs), lambda i: (i, 0)),   # x tiled over batch
            resident(w1), resident(b1),
            resident(w2), resident(b2),
            resident(w3), resident(b3),
        ],
        out_specs=pl.BlockSpec((tb, a_pad), lambda i: (i, 0)),
        compiler_params=pltpu.CompilerParams(
            dimension_semantics=("parallel",)),  # split batch tiles across TCs
    )(x, w1, b1, w2, b2, w3, b3)

    return out[:B, :n_actions]


def init_params(key, n_observations, n_actions):
    """Deterministic synthetic parameters (same shapes as the nn.Linear layers),
    stored transposed (in, out) so the kernel computes y = x @ W + b."""
    ks = jax.random.split(key, 6)

    def lin(kw, kb, fan_in, fan_out):
        bound = 1.0 / jnp.sqrt(fan_in)
        w = jax.random.uniform(kw, (fan_in, fan_out), jnp.float32, -bound, bound)
        b = jax.random.uniform(kb, (1, fan_out), jnp.float32, -bound, bound)
        return w, b

    w1, b1 = lin(ks[0], ks[1], n_observations, 64)
    w2, b2 = lin(ks[2], ks[3], 64, 32)
    w3, b3 = lin(ks[4], ks[5], 32, n_actions)
    return {"w1": w1, "b1": b1, "w2": w2, "b2": b2, "w3": w3, "b3": b3}


def dqn_reference(x, p):
    """Reference with the same bf16-MXU-input / f32-accumulate numerics."""
    bf = jnp.bfloat16
    h1 = jnp.dot(x.astype(bf), p["w1"].astype(bf),
                 preferred_element_type=jnp.float32) + p["b1"]
    h1 = jnp.maximum(h1, 0.0)
    h2 = jnp.dot(h1.astype(bf), p["w2"].astype(bf),
                 preferred_element_type=jnp.float32) + p["b2"]
    h2 = jnp.maximum(h2, 0.0)
    return jnp.dot(h2.astype(bf), p["w3"].astype(bf),
                   preferred_element_type=jnp.float32) + p["b3"]


if __name__ == "__main__":
    key = jax.random.PRNGKey(0)
    k_x, k_p = jax.random.split(key)

    batch = 8
    n_observations = 16
    n_actions = 4

    x = jax.random.normal(k_x, (batch, n_observations), jnp.float32)
    params = init_params(k_p, n_observations, n_actions)
    prepared = prepare_params(params, n_actions)

    logits = jax.block_until_ready(
        dqn_forward(x, prepared, n_actions=n_actions))
    ref = dqn_reference(x, params)

    assert logits.shape == (batch, n_actions)
    assert jnp.allclose(logits, ref, atol=1e-3, rtol=1e-3), (
        jnp.max(jnp.abs(logits - ref)))
    print("KERNEL_OK")
</pallas_src>

<mosaic_0001>
module attributes {stable_mosaic.version = 11 : i64} {
  func.func @dqn_kernel(%arg0: i32, %arg1: memref<8x16xf32, #tpu.memory_space<vmem>>, %arg2: memref<16x64xbf16, #tpu.memory_space<vmem>>, %arg3: memref<1x64xf32, #tpu.memory_space<vmem>>, %arg4: memref<64x32xbf16, #tpu.memory_space<vmem>>, %arg5: memref<1x32xf32, #tpu.memory_space<vmem>>, %arg6: memref<32x8xbf16, #tpu.memory_space<vmem>>, %arg7: memref<1x8xf32, #tpu.memory_space<vmem>>, %arg8: memref<8x8xf32, #tpu.memory_space<vmem>>) attributes {dimension_semantics = [#tpu.dimension_semantics<parallel>], iteration_bounds = array<i64: 1>, scalar_prefetch = 0 : i64, scratch_operands = 0 : i64, tpu.core_type = #tpu.core_type<tc>, window_params = [{transform_indices = @transform_0, window_bounds = array<i64: 8, 16>}, {pipeline_mode = #tpu.pipeline_mode<synchronous>, transform_indices = @transform_1, window_bounds = array<i64: 16, 64>}, {pipeline_mode = #tpu.pipeline_mode<synchronous>, transform_indices = @transform_2, window_bounds = array<i64: 1, 64>}, {pipeline_mode = #tpu.pipeline_mode<synchronous>, transform_indices = @transform_3, window_bounds = array<i64: 64, 32>}, {pipeline_mode = #tpu.pipeline_mode<synchronous>, transform_indices = @transform_4, window_bounds = array<i64: 1, 32>}, {pipeline_mode = #tpu.pipeline_mode<synchronous>, transform_indices = @transform_5, window_bounds = array<i64: 32, 8>}, {pipeline_mode = #tpu.pipeline_mode<synchronous>, transform_indices = @transform_6, window_bounds = array<i64: 1, 8>}, {transform_indices = @transform_7, window_bounds = array<i64: 8, 8>}]} {
    %c0 = arith.constant 0 : index
    %c0_0 = arith.constant 0 : index
    %0 = vector.load %arg1[%c0, %c0_0] : memref<8x16xf32, #tpu.memory_space<vmem>>, vector<8x16xf32>
    %1 = arith.truncf %0 : vector<8x16xf32> to vector<8x16xbf16>
    %c0_1 = arith.constant 0 : index
    %c0_2 = arith.constant 0 : index
    %2 = vector.load %arg2[%c0_1, %c0_2] : memref<16x64xbf16, #tpu.memory_space<vmem>>, vector<16x64xbf16>
    %cst = arith.constant dense<0.000000e+00> : vector<8x64xf32>
    %3 = tpu.matmul %1, %2, %cst {dimension_numbers = #tpu.dot_dimension_numbers<[1], [0], [0], [1], [0, 0, 1, 1], [], []>} : vector<8x16xbf16>, vector<16x64xbf16>, vector<8x64xf32> -> vector<8x64xf32>
    %c0_3 = arith.constant 0 : index
    %c0_4 = arith.constant 0 : index
    %4 = vector.load %arg3[%c0_3, %c0_4] : memref<1x64xf32, #tpu.memory_space<vmem>>, vector<1x64xf32>
    %5 = vector.broadcast %4 : vector<1x64xf32> to vector<8x64xf32>
    %6 = arith.addf %3, %5 : vector<8x64xf32>
    %cst_5 = arith.constant 0.000000e+00 : f32
    %7 = vector.broadcast %cst_5 : f32 to vector<8x64xf32>
    %8 = arith.maximumf %6, %7 : vector<8x64xf32>
    %9 = arith.truncf %8 : vector<8x64xf32> to vector<8x64xbf16>
    %c0_6 = arith.constant 0 : index
    %c0_7 = arith.constant 0 : index
    %10 = vector.load %arg4[%c0_6, %c0_7] : memref<64x32xbf16, #tpu.memory_space<vmem>>, vector<64x32xbf16>
    %cst_8 = arith.constant dense<0.000000e+00> : vector<8x32xf32>
    %11 = tpu.matmul %9, %10, %cst_8 {dimension_numbers = #tpu.dot_dimension_numbers<[1], [0], [0], [1], [0, 0, 1, 1], [], []>} : vector<8x64xbf16>, vector<64x32xbf16>, vector<8x32xf32> -> vector<8x32xf32>
    %c0_9 = arith.constant 0 : index
    %c0_10 = arith.constant 0 : index
    %12 = vector.load %arg5[%c0_9, %c0_10] : memref<1x32xf32, #tpu.memory_space<vmem>>, vector<1x32xf32>
    %13 = vector.broadcast %12 : vector<1x32xf32> to vector<8x32xf32>
    %14 = arith.addf %11, %13 : vector<8x32xf32>
    %cst_11 = arith.constant 0.000000e+00 : f32
    %15 = vector.broadcast %cst_11 : f32 to vector<8x32xf32>
    %16 = arith.maximumf %14, %15 : vector<8x32xf32>
    %17 = arith.truncf %16 : vector<8x32xf32> to vector<8x32xbf16>
    %c0_12 = arith.constant 0 : index
    %c0_13 = arith.constant 0 : index
    %18 = vector.load %arg6[%c0_12, %c0_13] : memref<32x8xbf16, #tpu.memory_space<vmem>>, vector<32x8xbf16>
    %cst_14 = arith.constant dense<0.000000e+00> : vector<8x8xf32>
    %19 = tpu.matmul %17, %18, %cst_14 {dimension_numbers = #tpu.dot_dimension_numbers<[1], [0], [0], [1], [0, 0, 1, 1], [], []>} : vector<8x32xbf16>, vector<32x8xbf16>, vector<8x8xf32> -> vector<8x8xf32>
    %c0_15 = arith.constant 0 : index
    %c0_16 = arith.constant 0 : index
    %20 = vector.load %arg7[%c0_15, %c0_16] : memref<1x8xf32, #tpu.memory_space<vmem>>, vector<1x8xf32>
    %21 = vector.broadcast %20 : vector<1x8xf32> to vector<8x8xf32>
    %22 = arith.addf %19, %21 : vector<8x8xf32>
    %c0_17 = arith.constant 0 : index
    %c0_18 = arith.constant 0 : index
    %23 = vector.load %arg8[%c0_17, %c0_18] : memref<8x8xf32, #tpu.memory_space<vmem>>, vector<8x8xf32>
    tpu.vector_store %arg8[%c0_17, %c0_18], %22 {strides = array<i32>} : memref<8x8xf32, #tpu.memory_space<vmem>>, vector<8x8xf32>,
    return
  }
  func.func @transform_0(%arg0: i32) -> (i32, i32) {
    %c0_i32 = arith.constant 0 : i32
    %c0_i32_0 = arith.constant 0 : i32
    return %arg0, %c0_i32 : i32, i32
  }
  func.func @transform_1(%arg0: i32) -> (i32, i32) {
    %c0_i32 = arith.constant 0 : i32
    %c0_i32_0 = arith.constant 0 : i32
    %c0_i32_1 = arith.constant 0 : i32
    return %c0_i32, %c0_i32_0 : i32, i32
  }
  func.func @transform_2(%arg0: i32) -> (i32, i32) {
    %c0_i32 = arith.constant 0 : i32
    %c0_i32_0 = arith.constant 0 : i32
    %c0_i32_1 = arith.constant 0 : i32
    return %c0_i32, %c0_i32_0 : i32, i32
  }
  func.func @transform_3(%arg0: i32) -> (i32, i32) {
    %c0_i32 = arith.constant 0 : i32
    %c0_i32_0 = arith.constant 0 : i32
    %c0_i32_1 = arith.constant 0 : i32
    return %c0_i32, %c0_i32_0 : i32, i32
  }
  func.func @transform_4(%arg0: i32) -> (i32, i32) {
    %c0_i32 = arith.constant 0 : i32
    %c0_i32_0 = arith.constant 0 : i32
    %c0_i32_1 = arith.constant 0 : i32
    return %c0_i32, %c0_i32_0 : i32, i32
  }
  func.func @transform_5(%arg0: i32) -> (i32, i32) {
    %c0_i32 = arith.constant 0 : i32
    %c0_i32_0 = arith.constant 0 : i32
    %c0_i32_1 = arith.constant 0 : i32
    return %c0_i32, %c0_i32_0 : i32, i32
  }
  func.func @transform_6(%arg0: i32) -> (i32, i32) {
    %c0_i32 = arith.constant 0 : i32
    %c0_i32_0 = arith.constant 0 : i32
    %c0_i32_1 = arith.constant 0 : i32
    return %c0_i32, %c0_i32_0 : i32, i32
  }
  func.func @transform_7(%arg0: i32) -> (i32, i32) {
    %c0_i32 = arith.constant 0 : i32
    %c0_i32_0 = arith.constant 0 : i32
    return %arg0, %c0_i32 : i32, i32
  }
}

</mosaic_0001>

<bundles_post_ra>
// kernel: dqn_forward.1
= control target key start
LH: loop header
LB: loop body
LE: loop exit
PB: predicated region body
PF: predicated region fallthrough
CT: control target
= control target key end

     0   :  { %v306_v0 = vmov 0.0   ;;  %vm307_vm0 = vmmov 0   ;;  %vm44_vm1 = vcmask 130048   ;;  %vm129_vm2 = vcmask 523264   ;;  %s384_s1 = inlined_call_operand.vmem [shape: bf16[16,64], index: 1, kind: input, shape index: {}]   ;;  %s385_s0 = inlined_call_operand.vmem [shape: f32[8,16], index: 0, kind: input, shape index: {}]   ;;  %s386_s3 = inlined_call_operand.vmem [shape: bf16[64,32], index: 3, kind: input, shape index: {}]   ;;  %s387_s5 = inlined_call_operand.vmem [shape: bf16[32,8], index: 5, kind: input, shape index: {}]   ;;  %s388_s2 = inlined_call_operand.vmem [shape: f32[1,64], index: 2, kind: input, shape index: {}]   ;;  %s389_s4 = inlined_call_operand.vmem [shape: f32[1,32], index: 4, kind: input, shape index: {}]   ;;  %s390_s6 = inlined_call_operand.vmem [shape: f32[1,8], index: 6, kind: input, shape index: {}]   ;;  %s391_s7 = inlined_call_operand.vmem [shape: f32[8,8], index: 7, kind: output, shape index: {}]  }
   0x1   :  { %271 = vmatprep.subr.bf16.mxu0 %v306_v0  ;;  %v299_v1 = vld [vmem:[%s384_s1] sm:$0xff]   ;;  %273 = vmatprep.mubr.msk.bf16.mxu0 %vm307_vm0, %v306_v0  ;;  %v301_v5 = vld [vmem:[%s386_s3 + $0x8] sm:$0xff]   ;;  %v302_v6 = vld [vmem:[%s386_s3 + $0x10] sm:$0xff]   ;;  %vm198_vm3 = vcmask 261120   ;;  %vm242_vm4 = vcmask 64512  }
   0x2   :  { %v27_v2 = vld [vmem:[%s385_s0] sm:$0xff]  ;;  %277 = vmatprep.subr.bf16.mxu1 %v306_v0  ;;  %285 = vmatprep.mubr.msk.bf16.mxu1 %vm307_vm0, %v306_v0  ;;  %v303_v7 = vld [vmem:[%s386_s3 + $0x18] sm:$0xff]   ;;  %v305_v17 = vld [vmem:[%s387_s5 + $0x8] sm:$0xff]  }
   0x3   :  { %272 = vmatpush3.bf16.msra.mxu0 %v299_v1  ;;  %v28_v3 = vpack.c.bf16 %v27_v2, %v27_v2  ;;  %v300_v4 = vld [vmem:[%s386_s3] sm:$0xff]  }
   0x4   :  { %289 = vmatprep.subr.bf16.mxu0 %v306_v0  ;;  %278 = vmatpush3.bf16.msra.mxu1 %v300_v4  ;;  %v304_v8 = vld [vmem:[%s387_s5] sm:$0xff]  }
   0x5   :  { %279 = vmatprep.subr.bf16.mxu1 %v306_v0  ;;  %v248_v9 = vld [vmem:[%s388_s2] ss:$0 sm:$0xff] }
   0x6   :  { %274 = vmatmul.mubr.msk.bf16.vlgmr.msra.gmra.mrb[0].mxu0 %vm44_vm1, %v28_v3  ;;  %v251_v18 = vld [vmem:[%s389_s4] ss:$0 sm:$0xff] }
   0x7   :  { %293 = vmatprep.mubr.msk.bf16.mxu0 %vm307_vm0, %v306_v0  ;;  %290 = vmatpush3.bf16.msra.mxu0 %v304_v8  ;;  %v257_v26 = vld [vmem:[%s390_s6] ss:$0 sm:$0xff] }
   0x8   :  { %280 = vmatpush3.bf16.msra.mxu1 %v301_v5  ;;  %291 = vmatprep.subr.bf16.mxu0 %v306_v0 }
   0x9   :  { %281 = vmatprep.subr.bf16.mxu1 %v306_v0 }
   0xb   :  { %292 = vmatpush3.bf16.msra.mxu0 %v305_v17 }
   0xc   :  { %282 = vmatpush3.bf16.msra.mxu1 %v302_v6 }
   0xd   :  { %283 = vmatprep.subr.bf16.mxu1 %v306_v0 }
  0x10   :  { %284 = vmatpush3.bf16.msra.mxu1 %v303_v7 }
  0xd9   :  { %v82_v10 = vpop.f32.mrb[0].mxu0 }
  0xda   :  { %v83_v11 = vadd.f32 %v248_v9, %v82_v10  ;;  %v275_v12 = vpop.f32.mrb[1].mxu0 }
  0xdb   :  { %v85_v13 = vpop.f32.mrb[2].mxu0 }
  0xdc   :  { %v88_v14 = vmax.f32 %v83_v11, 0.0  ;;  %v276_v15 = vpop.f32.mrb[3].mxu0 }
  0xde   :  { %v89_v16 = vpack.c.bf16 %v88_v14, %v88_v14 }
  0xe0   :  { %286 = vmatmul.mubr.msk.bf16.vlgmr.msra.gmra.mrb[0].mxu1 %vm129_vm2, %v89_v16 }
 0x1b3   :  { %v167_v19 = vpop.f32.mrb[0].mxu1 }
 0x1b4   :  { %v168_v20 = vadd.f32 %v251_v18, %v167_v19  ;;  %v287_v21 = vpop.f32.mrb[1].mxu1 }
 0x1b5   :  { %v170_v22 = vpop.f32.mrb[2].mxu1 }
 0x1b6   :  { %v173_v23 = vmax.f32 %v168_v20, 0.0  ;;  %v288_v24 = vpop.f32.mrb[3].mxu1 }
 0x1b8   :  { %v174_v25 = vpack.c.bf16 %v173_v23, %v173_v23 }
 0x1ba   :  { %294 = vmatmul.mubr.msk.bf16.vlgmr.msra.gmra.mrb[4].mxu0 %vm198_vm3, %v174_v25 }
 0x28d   :  { %v236_v27 = vpop.f32.mrb[4].mxu0 }
 0x28e   :  { %v237_v28 = vadd.f32 %v257_v26, %v236_v27  ;;  %v295_v29 = vpop.f32.mrb[5].mxu0 }
 0x28f   :  { %v239_v30 = vpop.f32.mrb[6].mxu0 }
 0x290   :  { %243 = vst.msk [vmem:[%s391_s7] sm:$0xff] %vm242_vm4, %v237_v28  ;;  %v296_v31 = vpop.f32.mrb[7].mxu0 }

</bundles_post_ra>
